<compile_context>
chip_gen: v6e
topology: v6e:2x2x1
jax: 0.10.0
libtpu: 0.0.40
codegen_flags: <defaults>
</compile_context>

<pallas_src>
import functools

import jax
import jax.numpy as jnp
from jax.experimental import pallas as pl
from jax.experimental.pallas import tpu as pltpu


def _round_up(x, m):
    return (x + m - 1) // m * m


def _pick_row_tile(H, W, max_lanes=2048):
    """Largest power-of-two row tile dividing H whose lane extent stays modest and
    is a multiple of 128 (falls back to full height).  On v7x (64 MiB VMEM) prefer
    max_lanes ~1024 at production channel counts."""
    th = H
    while th % 2 == 0 and th * W > max_lanes and ((th // 2) * W) % 128 == 0:
        th //= 2
    return th


def _unet_up_conv_kernel(x_ref, w_ref, y_ref, stats_ref, sum_sc, sq_sc, *,
                         w_in, row_tile):
    """Parity-decomposed ConvTranspose2d(4,2,1) for one (batch, C_out-tile, row-tile).

    x_ref:     (1, 1, C_in_pad, (TH+4)*W)   bf16 row-padded input tile (2-row halo)
    w_ref:     (1, 4, TCo, 4*C_in_pad)      bf16 per-parity K-stacked weights
    y_ref:     (1, 1, 4, TCo, TH*W)         bf16 pre-norm conv output (parity planes)
    stats_ref: (1, 1, TCo, 2)               f32 per-channel [sum, sumsq]
    sum_sc/sq_sc: (TCo, 1)                  f32 VMEM accumulators across row tiles
    """
    t = pl.program_id(2)
    L = row_tile * w_in
    WIN = (row_tile + 2) * w_in          # rows dr in {-1 .. TH} relative to the tile

    x = x_ref[0, 0]                      # (C_in_pad, (TH+4)*W) bf16

    # Two masked column-shifted copies of the whole window (dc = -1 / +1); the
    # center needs no copy.  A +-1 column shift wraps across rows in the
    # flattened layout; those lanes are the out-of-image taps -> zero.
    col = jax.lax.broadcasted_iota(jnp.int32, (1, WIN), 1) % w_in
    zero = jnp.zeros((), x.dtype)
    center = x[:, w_in:w_in + WIN]
    left = jnp.where(col != 0, x[:, w_in - 1:w_in - 1 + WIN], zero)
    right = jnp.where(col != w_in - 1, x[:, w_in + 1:w_in + 1 + WIN], zero)
    shifted = (left, center, right)      # indexed by dc + 1

    def slab(dr, dc):                    # (C_in_pad, L) slice, static offsets
        start = (dr + 1) * w_in
        return shifted[dc + 1][:, start:start + L]

    sum_acc = None
    sq_acc = None
    for a in (0, 1):          # output row parity
        for b in (0, 1):      # output column parity
            # Stack the 4 tap slabs along the contraction axis -> one MXU call.
            rhs = jnp.concatenate(
                [slab(a + rt - 1, b + ct - 1) for rt in (0, 1) for ct in (0, 1)],
                axis=0)                                       # (4*C_in_pad, L) bf16
            y = jnp.dot(w_ref[0, 2 * a + b], rhs,
                        preferred_element_type=jnp.float32)   # (TCo, L) f32
            y_ref[0, 0, 2 * a + b] = y.astype(y_ref.dtype)    # bf16 store

            ps = jnp.sum(y, axis=1, keepdims=True)            # stats from f32 y
            pq = jnp.sum(y * y, axis=1, keepdims=True)
            sum_acc = ps if sum_acc is None else sum_acc + ps
            sq_acc = pq if sq_acc is None else sq_acc + pq

    @pl.when(t == 0)
    def _():
        sum_sc[...] = jnp.zeros_like(sum_sc)
        sq_sc[...] = jnp.zeros_like(sq_sc)

    sum_sc[...] += sum_acc
    sq_sc[...] += sq_acc

    @pl.when(t == pl.num_programs(2) - 1)
    def _():
        stats_ref[0, 0, :, 0:1] = sum_sc[...]
        stats_ref[0, 0, :, 1:2] = sq_sc[...]


@functools.partial(jax.jit, static_argnames=("row_tile", "cout_tile"))
def unet_up_forward(x, skip, weight, bias=None, *, row_tile=None, cout_tile=None):
    """UNetUp.forward: ConvTranspose2d(4,2,1) -> InstanceNorm2d -> ReLU -> cat(skip).

    x:      (N, C_in, H, W)
    skip:   (N, C_skip, 2H, 2W)
    weight: (C_in, C_out, 4, 4)  PyTorch ConvTranspose2d layout
    bias:   (C_out,) accepted but unused: InstanceNorm (affine=False) subtracts the
            per-channel mean, so a constant per-channel bias cancels exactly.
    """
    del bias
    N, C_in, H, W = x.shape
    C_out = weight.shape[1]

    if row_tile is None:
        row_tile = _pick_row_tile(H, W)
    TH = row_tile
    assert H % TH == 0, "row_tile must divide H"
    assert TH == H or (TH * W) % 128 == 0, "tile lane extent must be a multiple of 128"
    NT = H // TH
    L = TH * W

    if cout_tile is None:
        cout_tile = C_out if C_out <= 128 else 128
    TCo = cout_tile
    assert C_out % TCo == 0, "cout_tile must divide C_out"
    NCT = C_out // TCo

    # Pad C_in to a multiple of 16 (bf16 sublane packing) so the in-kernel
    # contraction-axis concat is tile-aligned; zero channels contribute nothing.
    C_in_pad = _round_up(C_in, 16)

    # Per-parity K-stacked weights:
    #   lhs[2a+b, co, (2rt+ct)*C_in_pad + ci] = weight[ci, co, 3-2rt-a, 3-2ct-b]
    wt = jnp.transpose(weight, (2, 3, 1, 0)).astype(jnp.bfloat16)   # (kh, kw, C_out, C_in)
    wt = jnp.pad(wt, ((0, 0), (0, 0), (0, 0), (0, C_in_pad - C_in)))
    w_stack = jnp.stack([
        jnp.concatenate([wt[3 - 2 * rt - a, 3 - 2 * ct - b]
                         for rt in (0, 1) for ct in (0, 1)], axis=1)
        for a in (0, 1) for b in (0, 1)
    ], axis=0)                                                       # (4, C_out, 4*C_in_pad)
    w_par = w_stack.reshape(4, NCT, TCo, 4 * C_in_pad).transpose(1, 0, 2, 3)

    # bf16 input, overlapping row tiles with a 2-row zero halo, flattened row-major
    # so every tap in the kernel is a static lane-contiguous slice.
    xb = jnp.pad(x.astype(jnp.bfloat16),
                 ((0, 0), (0, C_in_pad - C_in), (2, 2), (0, 0)))     # (N, Cp, H+4, W)
    x_tiles = jnp.stack(
        [xb[:, :, t * TH:t * TH + TH + 4, :] for t in range(NT)], axis=1)
    x_tiles = x_tiles.reshape(N, NT, C_in_pad, (TH + 4) * W)

    # VMEM budget estimate (double-buffered x / y blocks + weights + temporaries).
    x_blk = C_in_pad * (TH + 4) * W * 2
    w_blk = 4 * TCo * 4 * C_in_pad * 2
    y_blk = 4 * TCo * L * 2
    tmp = 3 * C_in_pad * (TH + 2) * W * 2 + 4 * C_in_pad * L * 2 + TCo * L * 4
    est = 2 * (x_blk + y_blk) + 2 * w_blk + tmp
    vmem_limit = int(min(max(3 * est, 32 * 1024 * 1024), 64 * 1024 * 1024))

    y_par, stats = pl.pallas_call(
        functools.partial(_unet_up_conv_kernel, w_in=W, row_tile=TH),
        out_shape=(
            jax.ShapeDtypeStruct((N, NCT, 4, TCo, H * W), jnp.bfloat16),  # parity planes
            jax.ShapeDtypeStruct((N, NCT, TCo, 2), jnp.float32),          # [sum, sumsq]
        ),
        grid_spec=pltpu.PrefetchScalarGridSpec(
            num_scalar_prefetch=0,
            grid=(N, NCT, NT),
            in_specs=[
                pl.BlockSpec((1, 1, C_in_pad, (TH + 4) * W),
                             lambda n, c, t: (n, t, 0, 0)),
                pl.BlockSpec((1, 4, TCo, 4 * C_in_pad),
                             lambda n, c, t: (c, 0, 0, 0)),
            ],
            out_specs=(
                pl.BlockSpec((1, 1, 4, TCo, L), lambda n, c, t: (n, c, 0, 0, t)),
                pl.BlockSpec((1, 1, TCo, 2), lambda n, c, t: (n, c, 0, 0)),
            ),
            scratch_shapes=[
                pltpu.VMEM((TCo, 1), jnp.float32),   # per-channel sum accumulator
                pltpu.VMEM((TCo, 1), jnp.float32),   # per-channel sumsq accumulator
            ],
        ),
        # Batch and channel-tile axes feed megacore / both v7x TensorCores; the
        # row-tile axis carries the stats accumulator -> "arbitrary".
        compiler_params=pltpu.CompilerParams(
            dimension_semantics=("parallel", "parallel", "arbitrary"),
            vmem_limit_bytes=vmem_limit),
    )(x_tiles, w_par)

    # Finalize (fused by XLA into one output-forming pass): InstanceNorm with
    # biased variance from sum/sumsq, ReLU, parity->NCHW interleave, concat skip.
    cnt = jnp.float32(4 * H * W)
    mean = stats[..., 0] / cnt                                   # (N, NCT, TCo)
    var = stats[..., 1] / cnt - jnp.square(mean)
    inv = jax.lax.rsqrt(var + 1e-5)
    y = (y_par.astype(jnp.float32) - mean[:, :, None, :, None]) * inv[:, :, None, :, None]
    y = jnp.maximum(y, 0.0)
    # y_par[n, ct, 2a+b, c, i*W + j]  ==  y_full[n, ct*TCo + c, 2i+a, 2j+b]
    y = y.reshape(N, NCT, 2, 2, TCo, H, W)
    y = jnp.transpose(y, (0, 1, 4, 5, 2, 6, 3)).reshape(N, C_out, 2 * H, 2 * W)
    return jnp.concatenate([y.astype(x.dtype), skip], axis=1)


if __name__ == "__main__":
    key = jax.random.PRNGKey(0)
    k1, k2, k3, k4 = jax.random.split(key, 4)

    N, C_in, H, W = 2, 4, 16, 16
    C_out = 16                                   # in_size=4, out_size=16
    x = jax.random.normal(k1, (N, C_in, H, W), jnp.float32)
    skip = jax.random.normal(k2, (N, C_out, 2 * H, 2 * W), jnp.float32)

    # Deterministic parameter init (PyTorch-like uniform bound).
    bound = 1.0 / float((C_in * 4 * 4) ** 0.5)
    weight = jax.random.uniform(k3, (C_in, C_out, 4, 4), jnp.float32, -bound, bound)
    bias = jax.random.uniform(k4, (C_out,), jnp.float32, -bound, bound)

    # Pure-JAX reference (ConvTranspose via dilated conv, exact f32).
    wf = jnp.flip(jnp.transpose(weight, (1, 0, 2, 3)), axis=(2, 3))
    yr = jax.lax.conv_general_dilated(
        x, wf, window_strides=(1, 1), padding=((2, 2), (2, 2)),
        lhs_dilation=(2, 2), dimension_numbers=("NCHW", "OIHW", "NCHW"),
        precision=jax.lax.Precision.HIGHEST) + bias[None, :, None, None]
    mu = yr.mean(axis=(2, 3), keepdims=True)
    vr = ((yr - mu) ** 2).mean(axis=(2, 3), keepdims=True)
    yr = jnp.maximum((yr - mu) * jax.lax.rsqrt(vr + 1e-5), 0.0)
    ref = jnp.concatenate([yr, skip], axis=1)

    # Config 1: two row tiles (exercises the tiled stats accumulator), one C_out tile.
    out1 = jax.block_until_ready(unet_up_forward(x, skip, weight, bias, row_tile=8))
    assert out1.shape == (N, 2 * C_out, 2 * H, 2 * W), out1.shape
    err1 = float(jnp.max(jnp.abs(out1 - ref)))
    assert jnp.allclose(out1, ref, atol=6e-2, rtol=6e-2), err1

    # Config 2: two C_out tiles (the extra parallel axis recommended for v7x's 2 TCs).
    out2 = jax.block_until_ready(unet_up_forward(x, skip, weight, bias, cout_tile=8))
    err2 = float(jnp.max(jnp.abs(out2 - ref)))
    assert jnp.allclose(out2, ref, atol=6e-2, rtol=6e-2), err2

    print("KERNEL_OK")
</pallas_src>

<mosaic_0001>
module attributes {stable_mosaic.version = 11 : i64} {
  func.func @_unet_up_conv_kernel(%arg0: i32, %arg1: i32, %arg2: i32, %arg3: memref<1x1x16x192xbf16, #tpu.memory_space<vmem>>, %arg4: memref<1x4x16x64xbf16, #tpu.memory_space<vmem>>, %arg5: memref<1x1x4x16x128xbf16, #tpu.memory_space<vmem>>, %arg6: memref<1x1x16x2xf32, #tpu.memory_space<vmem>>, %arg7: memref<16x1xf32, #tpu.memory_space<vmem>>, %arg8: memref<16x1xf32, #tpu.memory_space<vmem>>) attributes {dimension_semantics = [#tpu.dimension_semantics<parallel>, #tpu.dimension_semantics<parallel>, #tpu.dimension_semantics<arbitrary>], iteration_bounds = array<i64: 2, 1, 2>, scalar_prefetch = 0 : i64, scratch_operands = 2 : i64, tpu.core_type = #tpu.core_type<tc>, window_params = [{transform_indices = @transform_0, window_bounds = array<i64: 1, 1, 16, 192>}, {transform_indices = @transform_1, window_bounds = array<i64: 1, 4, 16, 64>}, {transform_indices = @transform_2, window_bounds = array<i64: 1, 1, 4, 16, 128>}, {transform_indices = @transform_3, window_bounds = array<i64: 1, 1, 16, 2>}]} {
    %c0 = arith.constant 0 : index
    %c0_0 = arith.constant 0 : index
    %c0_1 = arith.constant 0 : index
    %c0_2 = arith.constant 0 : index
    %0 = vector.load %arg3[%c0, %c0_0, %c0_1, %c0_2] : memref<1x1x16x192xbf16, #tpu.memory_space<vmem>>, vector<1x1x16x192xbf16>
    %1 = vector.shape_cast %0 : vector<1x1x16x192xbf16> to vector<16x192xbf16>
    %2 = tpu.iota {dimensions = array<i32: 1>} : vector<1x160xi32>
    %c16_i32 = arith.constant 16 : i32
    %c0_i32 = arith.constant 0 : i32
    %3 = arith.cmpi eq, %c16_i32, %c0_i32 : i32
    %c1_i32 = arith.constant 1 : i32
    %4 = arith.select %3, %c1_i32, %c16_i32 : i32
    %5 = vector.broadcast %4 : i32 to vector<1x160xi32>
    %6 = arith.remsi %2, %5 : vector<1x160xi32>
    %c0_i32_3 = arith.constant 0 : i32
    %7 = vector.broadcast %c0_i32_3 : i32 to vector<1x160xi32>
    %8 = arith.cmpi ne, %6, %7 : vector<1x160xi32>
    %c0_i32_4 = arith.constant 0 : i32
    %9 = vector.broadcast %c0_i32_4 : i32 to vector<1x160xi32>
    %10 = arith.cmpi slt, %6, %9 : vector<1x160xi32>
    %c0_i32_5 = arith.constant 0 : i32
    %11 = arith.cmpi slt, %4, %c0_i32_5 : i32
    %12 = vector.broadcast %11 : i1 to vector<1x160xi1>
    %13 = vector.broadcast %12 : vector<1x160xi1> to vector<1x160xi1>
    %14 = arith.xori %10, %13 : vector<1x160xi1>
    %15 = arith.andi %14, %8 : vector<1x160xi1>
    %16 = vector.broadcast %4 : i32 to vector<1x160xi32>
    %17 = arith.addi %6, %16 : vector<1x160xi32>
    %18 = arith.select %15, %17, %6 : vector<1x160xi1>, vector<1x160xi32>
    %19 = vector.extract_strided_slice %1 {offsets = [0, 16], sizes = [16, 160], strides = [1, 1]} : vector<16x192xbf16> to vector<16x160xbf16>
    %c0_i32_6 = arith.constant 0 : i32
    %20 = vector.broadcast %c0_i32_6 : i32 to vector<1x160xi32>
    %21 = arith.cmpi ne, %18, %20 : vector<1x160xi32>
    %22 = vector.extract_strided_slice %1 {offsets = [0, 15], sizes = [16, 160], strides = [1, 1]} : vector<16x192xbf16> to vector<16x160xbf16>
    %cst = arith.constant 0.000000e+00 : bf16
    %23 = vector.shape_cast %21 : vector<1x160xi1> to vector<1x160xi1>
    %24 = vector.broadcast %23 : vector<1x160xi1> to vector<16x160xi1>
    %25 = vector.broadcast %cst : bf16 to vector<16x160xbf16>
    %26 = arith.select %24, %22, %25 : vector<16x160xi1>, vector<16x160xbf16>
    %c15_i32 = arith.constant 15 : i32
    %27 = vector.broadcast %c15_i32 : i32 to vector<1x160xi32>
    %28 = arith.cmpi ne, %18, %27 : vector<1x160xi32>
    %29 = vector.extract_strided_slice %1 {offsets = [0, 17], sizes = [16, 160], strides = [1, 1]} : vector<16x192xbf16> to vector<16x160xbf16>
    %cst_7 = arith.constant 0.000000e+00 : bf16
    %30 = vector.shape_cast %28 : vector<1x160xi1> to vector<1x160xi1>
    %31 = vector.broadcast %30 : vector<1x160xi1> to vector<16x160xi1>
    %32 = vector.broadcast %cst_7 : bf16 to vector<16x160xbf16>
    %33 = arith.select %31, %29, %32 : vector<16x160xi1>, vector<16x160xbf16>
    %34 = vector.extract_strided_slice %26 {offsets = [0, 0], sizes = [16, 128], strides = [1, 1]} : vector<16x160xbf16> to vector<16x128xbf16>
    %35 = vector.extract_strided_slice %19 {offsets = [0, 0], sizes = [16, 128], strides = [1, 1]} : vector<16x160xbf16> to vector<16x128xbf16>
    %36 = vector.extract_strided_slice %26 {offsets = [0, 16], sizes = [16, 128], strides = [1, 1]} : vector<16x160xbf16> to vector<16x128xbf16>
    %37 = vector.extract_strided_slice %19 {offsets = [0, 16], sizes = [16, 128], strides = [1, 1]} : vector<16x160xbf16> to vector<16x128xbf16>
    %38 = tpu.concatenate %34, %35, %36, %37 in 0 : vector<16x128xbf16>, vector<16x128xbf16>, vector<16x128xbf16>, vector<16x128xbf16> -> vector<64x128xbf16>
    %c0_8 = arith.constant 0 : index
    %c0_9 = arith.constant 0 : index
    %c0_10 = arith.constant 0 : index
    %c0_11 = arith.constant 0 : index
    %39 = vector.load %arg4[%c0_8, %c0_9, %c0_10, %c0_11] : memref<1x4x16x64xbf16, #tpu.memory_space<vmem>>, vector<1x1x16x64xbf16>
    %40 = vector.shape_cast %39 : vector<1x1x16x64xbf16> to vector<16x64xbf16>
    %cst_12 = arith.constant dense<0.000000e+00> : vector<16x128xf32>
    %41 = tpu.matmul %40, %38, %cst_12 {dimension_numbers = #tpu.dot_dimension_numbers<[1], [0], [0], [1], [0, 0, 1, 1], [], []>} : vector<16x64xbf16>, vector<64x128xbf16>, vector<16x128xf32> -> vector<16x128xf32>
    %42 = arith.truncf %41 : vector<16x128xf32> to vector<16x128xbf16>
    %c0_13 = arith.constant 0 : index
    %c0_14 = arith.constant 0 : index
    %c0_15 = arith.constant 0 : index
    %c0_16 = arith.constant 0 : index
    %c0_17 = arith.constant 0 : index
    %43 = vector.load %arg5[%c0_13, %c0_14, %c0_15, %c0_16, %c0_17] : memref<1x1x4x16x128xbf16, #tpu.memory_space<vmem>>, vector<1x1x1x16x128xbf16>
    %44 = vector.shape_cast %43 : vector<1x1x1x16x128xbf16> to vector<16x128xbf16>
    %45 = vector.shape_cast %42 : vector<16x128xbf16> to vector<1x1x1x16x128xbf16>
    tpu.vector_store %arg5[%c0_13, %c0_14, %c0_15, %c0_16, %c0_17], %45 {strides = array<i32>} : memref<1x1x4x16x128xbf16, #tpu.memory_space<vmem>>, vector<1x1x1x16x128xbf16>,
    %cst_18 = arith.constant dense<0.000000e+00> : vector<16xf32>
    %46 = vector.multi_reduction <add>, %41, %cst_18 [1] : vector<16x128xf32> to vector<16xf32>
    %47 = vector.shape_cast %46 : vector<16xf32> to vector<16x1xf32>
    %48 = arith.mulf %41, %41 : vector<16x128xf32>
    %cst_19 = arith.constant dense<0.000000e+00> : vector<16xf32>
    %49 = vector.multi_reduction <add>, %48, %cst_19 [1] : vector<16x128xf32> to vector<16xf32>
    %50 = vector.shape_cast %49 : vector<16xf32> to vector<16x1xf32>
    %51 = vector.extract_strided_slice %19 {offsets = [0, 0], sizes = [16, 128], strides = [1, 1]} : vector<16x160xbf16> to vector<16x128xbf16>
    %52 = vector.extract_strided_slice %33 {offsets = [0, 0], sizes = [16, 128], strides = [1, 1]} : vector<16x160xbf16> to vector<16x128xbf16>
    %53 = vector.extract_strided_slice %19 {offsets = [0, 16], sizes = [16, 128], strides = [1, 1]} : vector<16x160xbf16> to vector<16x128xbf16>
    %54 = vector.extract_strided_slice %33 {offsets = [0, 16], sizes = [16, 128], strides = [1, 1]} : vector<16x160xbf16> to vector<16x128xbf16>
    %55 = tpu.concatenate %51, %52, %53, %54 in 0 : vector<16x128xbf16>, vector<16x128xbf16>, vector<16x128xbf16>, vector<16x128xbf16> -> vector<64x128xbf16>
    %c0_20 = arith.constant 0 : index
    %c1 = arith.constant 1 : index
    %c0_21 = arith.constant 0 : index
    %c0_22 = arith.constant 0 : index
    %56 = vector.load %arg4[%c0_20, %c1, %c0_21, %c0_22] : memref<1x4x16x64xbf16, #tpu.memory_space<vmem>>, vector<1x1x16x64xbf16>
    %57 = vector.shape_cast %56 : vector<1x1x16x64xbf16> to vector<16x64xbf16>
    %cst_23 = arith.constant dense<0.000000e+00> : vector<16x128xf32>
    %58 = tpu.matmul %57, %55, %cst_23 {dimension_numbers = #tpu.dot_dimension_numbers<[1], [0], [0], [1], [0, 0, 1, 1], [], []>} : vector<16x64xbf16>, vector<64x128xbf16>, vector<16x128xf32> -> vector<16x128xf32>
    %59 = arith.truncf %58 : vector<16x128xf32> to vector<16x128xbf16>
    %c0_24 = arith.constant 0 : index
    %c0_25 = arith.constant 0 : index
    %c1_26 = arith.constant 1 : index
    %c0_27 = arith.constant 0 : index
    %c0_28 = arith.constant 0 : index
    %60 = vector.load %arg5[%c0_24, %c0_25, %c1_26, %c0_27, %c0_28] : memref<1x1x4x16x128xbf16, #tpu.memory_space<vmem>>, vector<1x1x1x16x128xbf16>
    %61 = vector.shape_cast %60 : vector<1x1x1x16x128xbf16> to vector<16x128xbf16>
    %62 = vector.shape_cast %59 : vector<16x128xbf16> to vector<1x1x1x16x128xbf16>
    tpu.vector_store %arg5[%c0_24, %c0_25, %c1_26, %c0_27, %c0_28], %62 {strides = array<i32>} : memref<1x1x4x16x128xbf16, #tpu.memory_space<vmem>>, vector<1x1x1x16x128xbf16>,
    %cst_29 = arith.constant dense<0.000000e+00> : vector<16xf32>
    %63 = vector.multi_reduction <add>, %58, %cst_29 [1] : vector<16x128xf32> to vector<16xf32>
    %64 = vector.shape_cast %63 : vector<16xf32> to vector<16x1xf32>
    %65 = arith.mulf %58, %58 : vector<16x128xf32>
    %cst_30 = arith.constant dense<0.000000e+00> : vector<16xf32>
    %66 = vector.multi_reduction <add>, %65, %cst_30 [1] : vector<16x128xf32> to vector<16xf32>
    %67 = vector.shape_cast %66 : vector<16xf32> to vector<16x1xf32>
    %68 = arith.addf %47, %64 : vector<16x1xf32>
    %69 = arith.addf %50, %67 : vector<16x1xf32>
    %70 = vector.extract_strided_slice %26 {offsets = [0, 16], sizes = [16, 128], strides = [1, 1]} : vector<16x160xbf16> to vector<16x128xbf16>
    %71 = vector.extract_strided_slice %19 {offsets = [0, 16], sizes = [16, 128], strides = [1, 1]} : vector<16x160xbf16> to vector<16x128xbf16>
    %72 = vector.extract_strided_slice %26 {offsets = [0, 32], sizes = [16, 128], strides = [1, 1]} : vector<16x160xbf16> to vector<16x128xbf16>
    %73 = vector.extract_strided_slice %19 {offsets = [0, 32], sizes = [16, 128], strides = [1, 1]} : vector<16x160xbf16> to vector<16x128xbf16>
    %74 = tpu.concatenate %70, %71, %72, %73 in 0 : vector<16x128xbf16>, vector<16x128xbf16>, vector<16x128xbf16>, vector<16x128xbf16> -> vector<64x128xbf16>
    %c0_31 = arith.constant 0 : index
    %c2 = arith.constant 2 : index
    %c0_32 = arith.constant 0 : index
    %c0_33 = arith.constant 0 : index
    %75 = vector.load %arg4[%c0_31, %c2, %c0_32, %c0_33] : memref<1x4x16x64xbf16, #tpu.memory_space<vmem>>, vector<1x1x16x64xbf16>
    %76 = vector.shape_cast %75 : vector<1x1x16x64xbf16> to vector<16x64xbf16>
    %cst_34 = arith.constant dense<0.000000e+00> : vector<16x128xf32>
    %77 = tpu.matmul %76, %74, %cst_34 {dimension_numbers = #tpu.dot_dimension_numbers<[1], [0], [0], [1], [0, 0, 1, 1], [], []>} : vector<16x64xbf16>, vector<64x128xbf16>, vector<16x128xf32> -> vector<16x128xf32>
    %78 = arith.truncf %77 : vector<16x128xf32> to vector<16x128xbf16>
    %c0_35 = arith.constant 0 : index
    %c0_36 = arith.constant 0 : index
    %c2_37 = arith.constant 2 : index
    %c0_38 = arith.constant 0 : index
    %c0_39 = arith.constant 0 : index
    %79 = vector.load %arg5[%c0_35, %c0_36, %c2_37, %c0_38, %c0_39] : memref<1x1x4x16x128xbf16, #tpu.memory_space<vmem>>, vector<1x1x1x16x128xbf16>
    %80 = vector.shape_cast %79 : vector<1x1x1x16x128xbf16> to vector<16x128xbf16>
    %81 = vector.shape_cast %78 : vector<16x128xbf16> to vector<1x1x1x16x128xbf16>
    tpu.vector_store %arg5[%c0_35, %c0_36, %c2_37, %c0_38, %c0_39], %81 {strides = array<i32>} : memref<1x1x4x16x128xbf16, #tpu.memory_space<vmem>>, vector<1x1x1x16x128xbf16>,
    %cst_40 = arith.constant dense<0.000000e+00> : vector<16xf32>
    %82 = vector.multi_reduction <add>, %77, %cst_40 [1] : vector<16x128xf32> to vector<16xf32>
    %83 = vector.shape_cast %82 : vector<16xf32> to vector<16x1xf32>
    %84 = arith.mulf %77, %77 : vector<16x128xf32>
    %cst_41 = arith.constant dense<0.000000e+00> : vector<16xf32>
    %85 = vector.multi_reduction <add>, %84, %cst_41 [1] : vector<16x128xf32> to vector<16xf32>
    %86 = vector.shape_cast %85 : vector<16xf32> to vector<16x1xf32>
    %87 = arith.addf %68, %83 : vector<16x1xf32>
    %88 = arith.addf %69, %86 : vector<16x1xf32>
    %89 = vector.extract_strided_slice %19 {offsets = [0, 16], sizes = [16, 128], strides = [1, 1]} : vector<16x160xbf16> to vector<16x128xbf16>
    %90 = vector.extract_strided_slice %33 {offsets = [0, 16], sizes = [16, 128], strides = [1, 1]} : vector<16x160xbf16> to vector<16x128xbf16>
    %91 = vector.extract_strided_slice %19 {offsets = [0, 32], sizes = [16, 128], strides = [1, 1]} : vector<16x160xbf16> to vector<16x128xbf16>
    %92 = vector.extract_strided_slice %33 {offsets = [0, 32], sizes = [16, 128], strides = [1, 1]} : vector<16x160xbf16> to vector<16x128xbf16>
    %93 = tpu.concatenate %89, %90, %91, %92 in 0 : vector<16x128xbf16>, vector<16x128xbf16>, vector<16x128xbf16>, vector<16x128xbf16> -> vector<64x128xbf16>
    %c0_42 = arith.constant 0 : index
    %c3 = arith.constant 3 : index
    %c0_43 = arith.constant 0 : index
    %c0_44 = arith.constant 0 : index
    %94 = vector.load %arg4[%c0_42, %c3, %c0_43, %c0_44] : memref<1x4x16x64xbf16, #tpu.memory_space<vmem>>, vector<1x1x16x64xbf16>
    %95 = vector.shape_cast %94 : vector<1x1x16x64xbf16> to vector<16x64xbf16>
    %cst_45 = arith.constant dense<0.000000e+00> : vector<16x128xf32>
    %96 = tpu.matmul %95, %93, %cst_45 {dimension_numbers = #tpu.dot_dimension_numbers<[1], [0], [0], [1], [0, 0, 1, 1], [], []>} : vector<16x64xbf16>, vector<64x128xbf16>, vector<16x128xf32> -> vector<16x128xf32>
    %97 = arith.truncf %96 : vector<16x128xf32> to vector<16x128xbf16>
    %c0_46 = arith.constant 0 : index
    %c0_47 = arith.constant 0 : index
    %c3_48 = arith.constant 3 : index
    %c0_49 = arith.constant 0 : index
    %c0_50 = arith.constant 0 : index
    %98 = vector.load %arg5[%c0_46, %c0_47, %c3_48, %c0_49, %c0_50] : memref<1x1x4x16x128xbf16, #tpu.memory_space<vmem>>, vector<1x1x1x16x128xbf16>
    %99 = vector.shape_cast %98 : vector<1x1x1x16x128xbf16> to vector<16x128xbf16>
    %100 = vector.shape_cast %97 : vector<16x128xbf16> to vector<1x1x1x16x128xbf16>
    tpu.vector_store %arg5[%c0_46, %c0_47, %c3_48, %c0_49, %c0_50], %100 {strides = array<i32>} : memref<1x1x4x16x128xbf16, #tpu.memory_space<vmem>>, vector<1x1x1x16x128xbf16>,
    %cst_51 = arith.constant dense<0.000000e+00> : vector<16xf32>
    %101 = vector.multi_reduction <add>, %96, %cst_51 [1] : vector<16x128xf32> to vector<16xf32>
    %102 = vector.shape_cast %101 : vector<16xf32> to vector<16x1xf32>
    %103 = arith.mulf %96, %96 : vector<16x128xf32>
    %cst_52 = arith.constant dense<0.000000e+00> : vector<16xf32>
    %104 = vector.multi_reduction <add>, %103, %cst_52 [1] : vector<16x128xf32> to vector<16xf32>
    %105 = vector.shape_cast %104 : vector<16xf32> to vector<16x1xf32>
    %106 = arith.addf %87, %102 : vector<16x1xf32>
    %107 = arith.addf %88, %105 : vector<16x1xf32>
    %c0_i32_53 = arith.constant 0 : i32
    %108 = arith.cmpi eq, %arg2, %c0_i32_53 : i32
    %109 = arith.extui %108 : i1 to i32
    %c0_i32_54 = arith.constant 0 : i32
    %110 = arith.cmpi ne, %109, %c0_i32_54 : i32
    scf.if %110 {
      %cst_65 = arith.constant 0.000000e+00 : f32
      %120 = vector.broadcast %cst_65 : f32 to vector<16x1xf32>
      %c0_66 = arith.constant 0 : index
      %c0_67 = arith.constant 0 : index
      %121 = vector.load %arg7[%c0_66, %c0_67] : memref<16x1xf32, #tpu.memory_space<vmem>>, vector<16x1xf32>
      tpu.vector_store %arg7[%c0_66, %c0_67], %120 {strides = array<i32>} : memref<16x1xf32, #tpu.memory_space<vmem>>, vector<16x1xf32>,
      %cst_68 = arith.constant 0.000000e+00 : f32
      %122 = vector.broadcast %cst_68 : f32 to vector<16x1xf32>
      %c0_69 = arith.constant 0 : index
      %c0_70 = arith.constant 0 : index
      %123 = vector.load %arg8[%c0_69, %c0_70] : memref<16x1xf32, #tpu.memory_space<vmem>>, vector<16x1xf32>
      tpu.vector_store %arg8[%c0_69, %c0_70], %122 {strides = array<i32>} : memref<16x1xf32, #tpu.memory_space<vmem>>, vector<16x1xf32>,
    } else {
    }
    %c0_55 = arith.constant 0 : index
    %c0_56 = arith.constant 0 : index
    %111 = vector.load %arg7[%c0_55, %c0_56] : memref<16x1xf32, #tpu.memory_space<vmem>>, vector<16x1xf32>
    %112 = arith.addf %111, %106 : vector<16x1xf32>
    %c0_57 = arith.constant 0 : index
    %c0_58 = arith.constant 0 : index
    %113 = vector.load %arg7[%c0_57, %c0_58] : memref<16x1xf32, #tpu.memory_space<vmem>>, vector<16x1xf32>
    tpu.vector_store %arg7[%c0_57, %c0_58], %112 {strides = array<i32>} : memref<16x1xf32, #tpu.memory_space<vmem>>, vector<16x1xf32>,
    %c0_59 = arith.constant 0 : index
    %c0_60 = arith.constant 0 : index
    %114 = vector.load %arg8[%c0_59, %c0_60] : memref<16x1xf32, #tpu.memory_space<vmem>>, vector<16x1xf32>
    %115 = arith.addf %114, %107 : vector<16x1xf32>
    %c0_61 = arith.constant 0 : index
    %c0_62 = arith.constant 0 : index
    %116 = vector.load %arg8[%c0_61, %c0_62] : memref<16x1xf32, #tpu.memory_space<vmem>>, vector<16x1xf32>
    tpu.vector_store %arg8[%c0_61, %c0_62], %115 {strides = array<i32>} : memref<16x1xf32, #tpu.memory_space<vmem>>, vector<16x1xf32>,
    %c1_i32_63 = arith.constant 1 : i32
    %117 = arith.cmpi eq, %arg2, %c1_i32_63 : i32
    %118 = arith.extui %117 : i1 to i32
    %c0_i32_64 = arith.constant 0 : i32
    %119 = arith.cmpi ne, %118, %c0_i32_64 : i32
    scf.if %119 {
      %c0_65 = arith.constant 0 : index
      %c0_66 = arith.constant 0 : index
      %120 = vector.load %arg7[%c0_65, %c0_66] : memref<16x1xf32, #tpu.memory_space<vmem>>, vector<16x1xf32>
      %c0_67 = arith.constant 0 : index
      %c0_68 = arith.constant 0 : index
      %c0_69 = arith.constant 0 : index
      %c0_70 = arith.constant 0 : index
      %121 = vector.load %arg6[%c0_67, %c0_68, %c0_69, %c0_70] : memref<1x1x16x2xf32, #tpu.memory_space<vmem>>, vector<1x1x16x1xf32>
      %122 = vector.shape_cast %121 : vector<1x1x16x1xf32> to vector<16x1xf32>
      %123 = vector.shape_cast %120 : vector<16x1xf32> to vector<1x1x16x1xf32>
      tpu.vector_store %arg6[%c0_67, %c0_68, %c0_69, %c0_70], %123 {strides = array<i32>} : memref<1x1x16x2xf32, #tpu.memory_space<vmem>>, vector<1x1x16x1xf32>,
      %c0_71 = arith.constant 0 : index
      %c0_72 = arith.constant 0 : index
      %124 = vector.load %arg8[%c0_71, %c0_72] : memref<16x1xf32, #tpu.memory_space<vmem>>, vector<16x1xf32>
      %c0_73 = arith.constant 0 : index
      %c0_74 = arith.constant 0 : index
      %c0_75 = arith.constant 0 : index
      %c1_76 = arith.constant 1 : index
      %125 = vector.load %arg6[%c0_73, %c0_74, %c0_75, %c1_76] : memref<1x1x16x2xf32, #tpu.memory_space<vmem>>, vector<1x1x16x1xf32>
      %126 = vector.shape_cast %125 : vector<1x1x16x1xf32> to vector<16x1xf32>
      %127 = vector.shape_cast %124 : vector<16x1xf32> to vector<1x1x16x1xf32>
      tpu.vector_store %arg6[%c0_73, %c0_74, %c0_75, %c1_76], %127 {strides = array<i32>} : memref<1x1x16x2xf32, #tpu.memory_space<vmem>>, vector<1x1x16x1xf32>,
    } else {
    }
    return
  }
  func.func @transform_0(%arg0: i32, %arg1: i32, %arg2: i32) -> (i32, i32, i32, i32) {
    %c0_i32 = arith.constant 0 : i32
    %c0_i32_0 = arith.constant 0 : i32
    %c0_i32_1 = arith.constant 0 : i32
    return %arg0, %arg2, %c0_i32, %c0_i32_0 : i32, i32, i32, i32
  }
  func.func @transform_1(%arg0: i32, %arg1: i32, %arg2: i32) -> (i32, i32, i32, i32) {
    %c0_i32 = arith.constant 0 : i32
    %c0_i32_0 = arith.constant 0 : i32
    %c0_i32_1 = arith.constant 0 : i32
    %c0_i32_2 = arith.constant 0 : i32
    return %arg1, %c0_i32, %c0_i32_0, %c0_i32_1 : i32, i32, i32, i32
  }
  func.func @transform_2(%arg0: i32, %arg1: i32, %arg2: i32) -> (i32, i32, i32, i32, i32) {
    %c0_i32 = arith.constant 0 : i32
    %c0_i32_0 = arith.constant 0 : i32
    %c0_i32_1 = arith.constant 0 : i32
    return %arg0, %arg1, %c0_i32, %c0_i32_0, %arg2 : i32, i32, i32, i32, i32
  }
  func.func @transform_3(%arg0: i32, %arg1: i32, %arg2: i32) -> (i32, i32, i32, i32) {
    %c0_i32 = arith.constant 0 : i32
    %c0_i32_0 = arith.constant 0 : i32
    %c0_i32_1 = arith.constant 0 : i32
    return %arg0, %arg1, %c0_i32, %c0_i32_0 : i32, i32, i32, i32
  }
}

</mosaic_0001>

<bundles_post_ra>
// kernel: unet_up_forward.1
= control target key start
LH: loop header
LB: loop body
LE: loop exit
PB: predicated region body
PF: predicated region fallthrough
CT: control target
= control target key end

     0   :  { %s1351_s12 = smov 0   ;;  %s1353_s13 = smov 0   ;;  %s1605_s0 = inlined_call_operand.vmem [shape: bf16[2,2,16,192], index: 0, kind: input, shape index: {}]   ;;  %s1606_s1 = inlined_call_operand.vmem [shape: bf16[1,4,16,64], index: 1, kind: input, shape index: {}]   ;;  %s1607_s2 = inlined_call_operand.vmem [shape: bf16[2,1,4,16,256], index: 2, kind: output, shape index: {0}]   ;;  %s1608_s3 = inlined_call_operand.vmem [shape: f32[2,1,16,2], index: 3, kind: output, shape index: {1}]  }
   0x1   :  { %s1355_s14 = smov 0   ;;  %s1357_s15 = smov 0  }
   0x2   :  { %s1359_s16 = smov 0   ;;  %s1361_s17 = smov 0  }
   0x3   :  { %s1363_s18 = smov 0  }
   0x4 LB: > { %s26_s19 = sadd.s32 1, %s1308_s16  ;;  %s33_s20 = sadd.s32 1, %s1312_s17  ;;  %s1316_s18 = sphi %s1363_s18, %s14_s18   ;;  %s1312_s17 = sphi %s1361_s17, %s1617_s17   ;;  %s1308_s16 = sphi %s1359_s16, %s1616_s16   ;;  %s1304_s15 = sphi %s1357_s15, %s1615_s15   ;;  %s1300_s14 = sphi %s1355_s14, %s1614_s14   ;;  %s1296_s13 = sphi %s1353_s13, %s1613_s13   ;;  %s1292_s12 = sphi %s1351_s12, %s1612_s12  }
   0x5   : > { %p27_p0 = scmp.ge.s32.totalorder %s26_s19, 2  ;;  %s1034_s21 = sadd.s32 4294967295, %s1316_s18  }
   0x6   : > { %p108_p1 = scmp.ne.s32.totalorder %s1296_s13, %s1292_s12  ;;  %p109_p2 = scmp.eq.s32.totalorder %s1034_s21, 3 }
   0x7   : > { %s1619_s19 = smov (%p27_p0, %s26_s19), 0  ;;  %s1621_s20 = smov (!%p27_p0, %s33_s20), %s1312_s17 }
   0x8   : > { %s94_s22 = ssub.s32 %s1308_s16, %s1619_s19  ;;  %p35_p3 = scmp.ge.s32.totalorder %s1621_s20, 2 }
   0x9   : > { %p1039_p4 = scmp.ge.s32.totalorder %s1316_s18, 1  ;;  %p1397_p5 = por %p109_p2, %p108_p1 }
   0xa   : > { %p181_p6 = scmp.lt.s32.totalorder %s1316_s18, 5  ;;  %s1623_s20 = smov (%p35_p3, %s1621_s20), 0 }
   0xb   : > { %s91_s24 = ssub.s32 %s1312_s17, %s1623_s20  ;;  %s98_s26 = sadd.s32 1, %s1296_s13 }
   0xc   : > { %p182_p7 = pnand %p1039_p4, %p181_p6  ;;  %s95_s25 = sor.u32 %s94_s22, %s91_s24 }
   0xd   : > { %p96_p8 = scmp.eq.s32.totalorder %s95_s25, 0  ;;  %p222_p9 = scmp.lt.s32.totalorder (!%p182_p7), %s1304_s15, 1 }
   0xe   : > { %185 = sbr.rel (%p182_p7) target bundleno = 935 (0x3a7), region = 28  ;;  %p224_p10 = scmp.lt.s32.totalorder (!%p182_p7), %s1300_s14, 1 }
   0xf   : > { %s1408_s27 = scalar_select %p96_p8, %s1296_s13, %s98_s26  }
  0x10   : > { %s1319_s24 = smov (!%p182_p7), 17   ;;  %s1320_s25 = smov (!%p182_p7), 111  }
  0x11   : > { %s1321_s26 = smov (!%p182_p7), 15   ;;  %p1080_p11 = scmp.ne.s32.totalorder (!%p182_p7), %s1300_s14, 0 }
  0x13   : > { %v250_v0 = vlaneseq  ;;  %s223_s28 = scalar_select %p222_p9, %s1304_s15, 1  ;;  %v1318_v6 = vmov 0   ;;  %vm304_vm6 = vcmask 138240   ;;  %vm288_vm8 = vcmask 121856  }
  0x14   : > { %s225_s29 = scalar_select %p224_p10, %s1300_s14, 1  ;;  %vm341_vm10 = vcmask 908288   ;;  %vm335_vm11 = vcmask 916480   ;;  %v1325_v33 = vmov 0.0   ;;  %vm329_vm12 = vcmask 1039360  }
  0x15   : > { %v251_v1 = vand.u32 127, %v250_v0  ;;  %s1042_s30 = sshll.u32 %s223_s28, 3  ;;  %s1087_s4 = sshll.u32 %s223_s28, 4  ;;  %1139 = vmatprep.subr.bf16.mxu0 %v1325_v33  ;;  %1151 = vmatprep.subr.bf16.mxu1 %v1325_v33  ;;  %vm366_vm13 = vcmask 924672   ;;  %vm1328_vm14 = vmmov 0   ;;  %vm583_vm15 = vcmask 793600  }
  0x16   : > { %s1041_s5 = sshll.u32 %s225_s29, 2  ;;  %s1417_s8 = scalar_lea.vmem %s1608_s3, %s1087_s4  ;;  %1147 = vmatprep.mubr.msk.bf16.mxu0 %vm1328_vm14, %v1325_v33  ;;  %1159 = vmatprep.mubr.msk.bf16.mxu1 %vm1328_vm14, %v1325_v33 }
  0x17   : > { %v252_v2 = vadd.s32 128, %v251_v1  ;;  %v257_v3 = vand.u32 15, %v251_v1  ;;  %s228_s9 = sadd.s32 %s1042_s30, %s1041_s5  ;;  %s1322_s28 = smov 112  }
  0x18   : > { %s1043_s10 = sshll.u32 %s228_s9, 2  ;;  %s1323_s29 = smov 127  }
  0x19   : > { %v264_v4 = vand.u32 15, %v252_v2  ;;  %vm293_vm0 = vcmp.ne.s32.totalorder %v257_v3, 15  ;;  %vm1419_vm1 = vcmp.ne.s32.totalorder %v257_v3, 0  ;;  %s230_s22 = scalar_lea.vmem %s1605_s0, %s1043_s10  ;;  %s1324_s30 = smov 113  }
  0x1a   : > { %v248_v8 = vld [vmem:[%s230_s22] sm:$0xff]  ;;  %v249_v9 = vld [vmem:[%s230_s22 + $0x8] sm:$0xff]  ;;  %s1326_s4 = smov 97   ;;  %s1327_s5 = smov 96  }
  0x1b   : > { %vm294_vm2 = vcmp.ne.s32.totalorder %v264_v4, 15  ;;  %vm278_vm3 = vcmp.ne.s32.totalorder %v264_v4, 0  ;;  %v1428_v10 = vcombine.low %v248_v8, %v249_v9  ;;  %v1431_v12 = vcombine.high %v248_v8, %v249_v9 }
  0x1c   : > { %vm299_vm4 = vmpackc.low %vm294_vm2, %vm293_vm0  ;;  %vm375_vm0 = vcmask 523264  }
  0x1d   : > { %v300_v7 = vsel %vm299_vm4, 65537, %v1318_v6  ;;  %vm283_vm5 = vmpackc.low %vm278_vm3, %vm1419_vm1  ;;  %337 = vrot.lane.b32.xlu1 %v1428_v10, %s1320_s25  ;;  %vm685_vm1 = vcmask 785408  }
  0x1e   : > { %301 = vrot.lane.b32.xlu0 %v300_v7, %s1319_s24  ;;  %v284_v11 = vsel %vm283_vm5, 65537, %v1318_v6 }
  0x21   : > { %339 = vrot.lane.b32.xlu1 %v1431_v12, %s1320_s25 }
  0x22   : > { %285 = vrot.lane.b32.xlu0 %v284_v11, %s1321_s26 }
  0x25   : > { %455 = vrot.lane.b32.xlu1 %v1431_v12, %s1322_s28 }
  0x26   : > { %453 = vrot.lane.b32.xlu0 %v1428_v10, %s1322_s28 }
  0x8f   : > { %v338_v27 = vpop.permute.xlu1 %337 }
  0x90   : > { %v302_v13 = vpop.permute.xlu0 %301 }
  0x91   : > { %v303_v14 = vrot.slane %v302_v13, 4 }
  0x93   : > { %v305_v15 = vsel %vm304_vm6, %v303_v14, %v302_v13  ;;  %v340_v28 = vpop.permute.xlu1 %339  ;;  %v1259_v13 = vld [vmem:[%s1606_s1 + $0x8] sm:$0xff]  }
  0x94   : > { %vm306_vm7 = vcmp.ne.s16.totalorder %v305_v15, 0  ;;  %v286_v16 = vpop.permute.xlu0 %285  ;;  %v342_v29 = vsel %vm341_vm10, %v338_v27, %v340_v28 }
  0x95   : > { %v307_v17 = vsel %vm306_vm7, %v248_v8, 0  ;;  %v308_v18 = vsel %vm306_vm7, %v249_v9, 0  ;;  %v287_v19 = vrot.slane %v286_v16, 4 }
  0x96   : > { %v1055_v20 = vcombine.high %v307_v17, %v308_v18  ;;  %v1054_v21 = vcombine.low %v307_v17, %v308_v18 }
  0x97   : > { %v289_v22 = vsel %vm288_vm8, %v287_v19, %v286_v16  ;;  %v456_v31 = vpop.permute.xlu1 %455 }
  0x98   : > { %vm290_vm9 = vcmp.ne.s16.totalorder %v289_v22, 0  ;;  %460 = vrot.lane.b32.xlu1 %v1055_v20, %s1320_s25  ;;  %458 = vrot.lane.b32.xlu0 %v1054_v21, %s1320_s25  ;;  %v454_v30 = vpop.permute.xlu0 %453  ;;  %s208_s25 = sand.u32 1, %s1292_s12  }
  0x99   : > { %v291_v23 = vsel %vm290_vm9, %v248_v8, 0  ;;  %v292_v24 = vsel %vm290_vm9, %v249_v9, 0  ;;  %v1452_v32 = vsel %vm335_vm11, %v454_v30, %v456_v31  ;;  %v1258_v9 = vld [vmem:[%s1606_s1] sm:$0xff]   ;;  %v1261_v30 = vld [vmem:[%s1606_s1 + $0x18] sm:$0xff]   ;;  %s1040_s26 = sshll.u32 %s208_s25, 5 }
  0x9a   : > { %v1438_v25 = vcombine.high %v291_v23, %v292_v24  ;;  %v1440_v26 = vcombine.low %v291_v23, %v292_v24 }
  0x9c   : > { %333 = vrot.lane.b32.xlu1 %v1438_v25, %s1322_s28  ;;  %331 = vrot.lane.b32.xlu0 %v1440_v26, %s1322_s28 }
  0xa0   : > { %327 = vrot.lane.b32.xlu1 %v1431_v12, %s1323_s29  ;;  %325 = vrot.lane.b32.xlu0 %v1428_v10, %s1323_s29 }
  0xa4   : > { %450 = vrot.lane.b32.xlu1 %v1055_v20, %s1323_s29  ;;  %448 = vrot.lane.b32.xlu0 %v1054_v21, %s1323_s29 }
  0xa8   : > { %364 = vrot.lane.b32.xlu1 %v340_v28, %s1324_s30  ;;  %362 = vrot.lane.b32.xlu0 %v342_v29, %s1324_s30 }
  0xac   : > { %477 = vrot.lane.b32.xlu1 %v456_v31, %s1322_s28  ;;  %475 = vrot.lane.b32.xlu0 %v1452_v32, %s1322_s28 }
 0x10a   : > { %v461_v34 = vpop.permute.xlu1 %460  ;;  %v459_v35 = vpop.permute.xlu0 %458 }
 0x10b   : > { %v462_v46 = vsel %vm341_vm10, %v459_v35, %v461_v34 }
 0x10e   : > { %v334_v36 = vpop.permute.xlu1 %333  ;;  %v332_v37 = vpop.permute.xlu0 %331 }
 0x10f   : > { %v336_v47 = vsel %vm335_vm11, %v332_v37, %v334_v36 }
 0x112   : > { %v328_v38 = vpop.permute.xlu1 %327  ;;  %v326_v39 = vpop.permute.xlu0 %325 }
 0x113   : > { %356 = vrot.lane.b32.xlu1 %v328_v38, %s1324_s30  ;;  %v330_v40 = vsel %vm329_vm12, %v326_v39, %v328_v38 }
 0x114   : > { %354 = vrot.lane.b32.xlu0 %v330_v40, %s1324_s30 }
 0x116   : > { %v451_v41 = vpop.permute.xlu1 %450  ;;  %v449_v42 = vpop.permute.xlu0 %448 }
 0x117   : > { %581 = vrot.lane.b32.xlu1 %v340_v28, %s1326_s4  ;;  %v452_v48 = vsel %vm329_vm12, %v449_v42, %v451_v41 }
 0x118   : > { %579 = vrot.lane.b32.xlu0 %v342_v29, %s1326_s4 }
 0x11a   : > { %v365_v43 = vpop.permute.xlu1 %364  ;;  %v363_v44 = vpop.permute.xlu0 %362 }
 0x11b   : > { %679 = vrot.lane.b32.xlu1 %v456_v31, %s1327_s5  ;;  %v370_v45 = vsel %vm366_vm13, %v363_v44, %v365_v43 }
 0x11c   : > { %677 = vrot.lane.b32.xlu0 %v1452_v32, %s1327_s5  ;;  %1140 = vmatpush3.bf16.msra.mxu0 %v370_v45 }
 0x11d   : > { %1141 = vmatprep.subr.bf16.mxu0 %v1325_v33 }
 0x11e   : > { %v478_v49 = vpop.permute.xlu1 %477  ;;  %v476_v50 = vpop.permute.xlu0 %475 }
 0x11f   : > { %352 = vrot.lane.b32.xlu1 %v1438_v25, %s1324_s30  ;;  %v484_v1 = vsel %vm335_vm11, %v476_v50, %v478_v49 }
 0x120   : > { %350 = vrot.lane.b32.xlu0 %v1440_v26, %s1324_s30 }
 0x123   : > { %481 = vrot.lane.b32.xlu1 %v461_v34, %s1322_s28 }
 0x124   : > { %479 = vrot.lane.b32.xlu0 %v462_v46, %s1322_s28 }
 0x127   : > { %360 = vrot.lane.b32.xlu1 %v334_v36, %s1324_s30 }
 0x128   : > { %358 = vrot.lane.b32.xlu0 %v336_v47, %s1324_s30 }
 0x12b   : > { %473 = vrot.lane.b32.xlu1 %v451_v41, %s1322_s28 }
 0x12c   : > { %571 = vrot.lane.b32.xlu0 %v330_v40, %s1326_s4 }
 0x12f   : > { %683 = vrot.lane.b32.xlu1 %v461_v34, %s1327_s5 }
 0x130   : > { %471 = vrot.lane.b32.xlu0 %v452_v48, %s1322_s28  ;;  %s1551_s28 = scalar_lea.vmem [#allocation4], %s1040_s26 }
 0x133   : > { %577 = vrot.lane.b32.xlu1 %v334_v36, %s1326_s4 }
 0x134   : > { %681 = vrot.lane.b32.xlu0 %v462_v46, %s1327_s5 }
 0x137   : > { %573 = vrot.lane.b32.xlu1 %v328_v38, %s1326_s4 }
 0x138   : > { %575 = vrot.lane.b32.xlu0 %v336_v47, %s1326_s4 }
 0x13b   : > { %675 = vrot.lane.b32.xlu1 %v451_v41, %s1327_s5 }
 0x13c   : > { %567 = vrot.lane.b32.xlu0 %v1440_v26, %s1326_s4  ;;  %v1260_v26 = vld [vmem:[%s1606_s1 + $0x10] sm:$0xff]  }
 0x13f   : > { %569 = vrot.lane.b32.xlu1 %v1438_v25, %s1326_s4 }
 0x140   : > { %673 = vrot.lane.b32.xlu0 %v452_v48, %s1327_s5 }
 0x143   : > { %671 = vrot.lane.b32.xlu1 %v1431_v12, %s1327_s5 }
 0x144   : > { %669 = vrot.lane.b32.xlu0 %v1428_v10, %s1327_s5 }
 0x185   : > { %v357_v51 = vpop.permute.xlu1 %356 }
 0x186   : > { %v355_v52 = vpop.permute.xlu0 %354 }
 0x187   : > { %v368_v4 = vsel %vm366_vm13, %v355_v52, %v357_v51 }
 0x189   : > { %v582_v53 = vpop.permute.xlu1 %581 }
 0x18a   : > { %v580_v54 = vpop.permute.xlu0 %579 }
 0x18b   : > { %v587_v12 = vsel %vm583_vm15, %v580_v54, %v582_v53 }
 0x18d   : > { %v680_v55 = vpop.permute.xlu1 %679 }
 0x18e   : > { %v678_v56 = vpop.permute.xlu0 %677 }
 0x18f   : > { %v688_v20 = vsel %vm685_vm1, %v678_v56, %v680_v55 }
 0x191   : > { %v353_v57 = vpop.permute.xlu1 %352 }
 0x192   : > { %v351_v58 = vpop.permute.xlu0 %350 }
 0x193   : > { %v367_v7 = vsel %vm366_vm13, %v351_v58, %v353_v57 }
 0x195   : > { %v482_v59 = vpop.permute.xlu1 %481 }
 0x196   : > { %v480_v60 = vpop.permute.xlu0 %479 }
 0x197   : > { %v485_v61 = vsel %vm335_vm11, %v480_v60, %v482_v59 }
 0x198   : > { %1152 = vmatpush3.bf16.msra.mxu1 %v485_v61 }
 0x199   : > { %v361_v62 = vpop.permute.xlu1 %360  ;;  %1153 = vmatprep.subr.bf16.mxu1 %v1325_v33 }
 0x19a   : > { %v359_v63 = vpop.permute.xlu0 %358 }
 0x19b   : > { %v369_v0 = vsel %vm366_vm13, %v359_v63, %v361_v62 }
 0x19c   : > { %1142 = vmatpush3.bf16.msra.mxu0 %v369_v0  ;;  %1154 = vmatpush3.bf16.msra.mxu1 %v484_v1 }
 0x19d   : > { %v474_v2 = vpop.permute.xlu1 %473  ;;  %1143 = vmatprep.subr.bf16.mxu0 %v1325_v33  ;;  %1155 = vmatprep.subr.bf16.mxu1 %v1325_v33 }
 0x19e   : > { %v572_v3 = vpop.permute.xlu0 %571 }
 0x1a0   : > { %1144 = vmatpush3.bf16.msra.mxu0 %v368_v4 }
 0x1a1   : > { %v684_v5 = vpop.permute.xlu1 %683  ;;  %1145 = vmatprep.subr.bf16.mxu0 %v1325_v33 }
 0x1a2   : > { %v472_v6 = vpop.permute.xlu0 %471 }
 0x1a3   : > { %v483_v8 = vsel %vm335_vm11, %v472_v6, %v474_v2 }
 0x1a4   : > { %1146 = vmatpush3.bf16.msra.mxu0 %v367_v7  ;;  %1156 = vmatpush3.bf16.msra.mxu1 %v483_v8 }
 0x1a5   : > { %v578_v10 = vpop.permute.xlu1 %577  ;;  %1157 = vmatprep.subr.bf16.mxu1 %v1325_v33  ;;  %1163 = vmatprep.subr.bf16.mxu0 %v1325_v33 }
 0x1a6   : > { %v682_v11 = vpop.permute.xlu0 %681 }
 0x1a7   : > { %1148 = vmatmul.mubr.msk.bf16.vlgmr.msra.gmra.mxu0 %vm375_vm0, %v1258_v9  ;;  %v689_v16 = vsel %vm685_vm1, %v682_v11, %v684_v5 }
 0x1a8   : > { %1158 = vmatpush3.bf16.msra.mxu1 %v1452_v32  ;;  %1164 = vmatpush3.bf16.msra.mxu0 %v587_v12 }
 0x1a9   : > { %v574_v14 = vpop.permute.xlu1 %573  ;;  %1165 = vmatprep.subr.bf16.mxu0 %v1325_v33  ;;  %1175 = vmatprep.subr.bf16.mxu1 %v1325_v33 }
 0x1aa   : > { %v576_v15 = vpop.permute.xlu0 %575  ;;  %1171 = vmatprep.mubr.msk.bf16.mxu0 %vm1328_vm14, %v1325_v33  ;;  %v585_v21 = vsel %vm583_vm15, %v572_v3, %v574_v14 }
 0x1ab   : > { %v586_v17 = vsel %vm583_vm15, %v576_v15, %v578_v10  ;;  %1160 = vmatmul.mubr.msk.bf16.vlgmr.msra.gmra.mxu1 %vm375_vm0, %v1259_v13 }
 0x1ac   : > { %1166 = vmatpush3.bf16.msra.mxu0 %v586_v17  ;;  %1176 = vmatpush3.bf16.msra.mxu1 %v689_v16 }
 0x1ad   : > { %v676_v18 = vpop.permute.xlu1 %675  ;;  %1167 = vmatprep.subr.bf16.mxu0 %v1325_v33  ;;  %1177 = vmatprep.subr.bf16.mxu1 %v1325_v33 }
 0x1ae   : > { %v568_v19 = vpop.permute.xlu0 %567  ;;  %1183 = vmatprep.mubr.msk.bf16.mxu1 %vm1328_vm14, %v1325_v33 }
 0x1b0   : > { %1168 = vmatpush3.bf16.msra.mxu0 %v585_v21  ;;  %1178 = vmatpush3.bf16.msra.mxu1 %v688_v20 }
 0x1b1   : > { %v570_v22 = vpop.permute.xlu1 %569  ;;  %1169 = vmatprep.subr.bf16.mxu0 %v1325_v33  ;;  %1179 = vmatprep.subr.bf16.mxu1 %v1325_v33 }
 0x1b2   : > { %v584_v23 = vsel %vm583_vm15, %v568_v19, %v570_v22  ;;  %v674_v24 = vpop.permute.xlu0 %673 }
 0x1b3   : > { %v687_v25 = vsel %vm685_vm1, %v674_v24, %v676_v18 }
 0x1b4   : > { %1170 = vmatpush3.bf16.msra.mxu0 %v584_v23  ;;  %1180 = vmatpush3.bf16.msra.mxu1 %v687_v25 }
 0x1b5   : > { %v672_v27 = vpop.permute.xlu1 %671  ;;  %1181 = vmatprep.subr.bf16.mxu1 %v1325_v33 }
 0x1b6   : > { %v670_v28 = vpop.permute.xlu0 %669 }
 0x1b7   : > { %v686_v29 = vsel %vm685_vm1, %v670_v28, %v672_v27  ;;  %1172 = vmatmul.mubr.msk.bf16.vlgmr.msra.gmra.mxu0 %vm375_vm0, %v1260_v26 }
 0x1b8   : > { %1182 = vmatpush3.bf16.msra.mxu1 %v686_v29 }
 0x1bb   : > { %1184 = vmatmul.mubr.msk.bf16.vlgmr.msra.gmra.mxu1 %vm375_vm0, %v1261_v30 }
 0x267   : > { %v413_v31 = vpop.f32.mrf.mxu0 }
 0x268   : > { %430 = vadd.xlane.f32.xlu0 %v413_v31  ;;  %v434_v34 = vmul.f32 %v413_v31, %v413_v31 }
 0x269   : > { %v1149_v32 = vpop.f32.mrf.mxu0 }
 0x26b   : > { %v416_v35 = vpop.f32.mrf.mxu0  ;;  %v527_v33 = vpop.f32.mrf.mxu1 }
 0x26c   : > { %v1099_v36 = vpack.c.bf16 %v416_v35, %v413_v31  ;;  %436 = vadd.xlane.f32.xlu0 %v434_v34  ;;  %432 = vadd.xlane.f32.xlu1 %v416_v35  ;;  %v435_v39 = vmul.f32 %v416_v35, %v416_v35  ;;  %v549_v43 = vmul.f32 %v527_v33, %v527_v33 }
 0x26d   : > { %v1150_v37 = vpop.f32.mrf.mxu0  ;;  %v1161_v38 = vpop.f32.mrf.mxu1 }
 0x26e   : > { %1100 = vst [vmem:[%s1551_s28] sm:$0xff] %v1099_v36  }
 0x26f   : > { %v530_v40 = vpop.f32.mrf.mxu1 }
 0x270   : > { %v1104_v41 = vpack.c.bf16 %v530_v40, %v527_v33  ;;  %438 = vadd.xlane.f32.xlu0 %v435_v39  ;;  %545 = vadd.xlane.f32.xlu1 %v527_v33  ;;  %v550_v44 = vmul.f32 %v530_v40, %v530_v40 }
 0x271   : > { %v1162_v42 = vpop.f32.mrf.mxu1 }
 0x272   : > { %1116 = vst [vmem:[%s1551_s28 + $0x8] sm:$0xff] %v1104_v41  }
 0x274   : > { %551 = vadd.xlane.f32.xlu1 %v549_v43  ;;  %547 = vadd.xlane.f32.xlu0 %v530_v40 }
 0x277   : > { %v629_v45 = vpop.f32.mrf.mxu0 }
 0x278   : > { %553 = vadd.xlane.f32.xlu0 %v550_v44  ;;  %647 = vadd.xlane.f32.xlu1 %v629_v45  ;;  %v651_v47 = vmul.f32 %v629_v45, %v629_v45 }
 0x279   : > { %v1173_v46 = vpop.f32.mrf.mxu0 }
 0x27b   : > { %v632_v48 = vpop.f32.mrf.mxu0  ;;  %v731_v49 = vpop.f32.mrf.mxu1 }
 0x27c   : > { %v1109_v50 = vpack.c.bf16 %v632_v48, %v629_v45  ;;  %653 = vadd.xlane.f32.xlu1 %v651_v47  ;;  %649 = vadd.xlane.f32.xlu0 %v632_v48  ;;  %v652_v53 = vmul.f32 %v632_v48, %v632_v48  ;;  %v753_v57 = vmul.f32 %v731_v49, %v731_v49 }
 0x27d   : > { %v1174_v51 = vpop.f32.mrf.mxu0  ;;  %v1185_v52 = vpop.f32.mrf.mxu1 }
 0x27e   : > { %1117 = vst [vmem:[%s1551_s28 + $0x10] sm:$0xff] %v1109_v50  }
 0x27f   : > { %v734_v54 = vpop.f32.mrf.mxu1 }
 0x280   : > { %v1114_v55 = vpack.c.bf16 %v734_v54, %v731_v49  ;;  %655 = vadd.xlane.f32.xlu0 %v652_v53  ;;  %749 = vadd.xlane.f32.xlu1 %v731_v49  ;;  %v754_v58 = vmul.f32 %v734_v54, %v734_v54 }
 0x281   : > { %v1186_v56 = vpop.f32.mrf.mxu1 }
 0x282   : > { %1118 = vst [vmem:[%s1551_s28 + $0x18] sm:$0xff] %v1114_v55  }
 0x284   : > { %755 = vadd.xlane.f32.xlu1 %v753_v57  ;;  %751 = vadd.xlane.f32.xlu0 %v734_v54 }
 0x288   : > { %757 = vadd.xlane.f32.xlu0 %v754_v58 }
 0x2f1   : > { %v431_v59 = vpop.xlane.xlu0 %430 }
 0x2f5   : > { %v433_v60 = vpop.xlane.xlu1 %432  ;;  %v437_v61 = vpop.xlane.xlu0 %436 }
 0x2f9   : > { %v546_v62 = vpop.xlane.xlu1 %545  ;;  %v439_v63 = vpop.xlane.xlu0 %438 }
 0x2fa   : > { %v555_v6 = vadd.f32 %v546_v62, %v431_v59 }
 0x2fd   : > { %v552_v0 = vpop.xlane.xlu1 %551  ;;  %v548_v1 = vpop.xlane.xlu0 %547 }
 0x2fe   : > { %v557_v10 = vadd.f32 %v552_v0, %v437_v61  ;;  %v556_v11 = vadd.f32 %v548_v1, %v433_v60 }
 0x301   : > { %v648_v2 = vpop.xlane.xlu1 %647  ;;  %v554_v3 = vpop.xlane.xlu0 %553 }
 0x302   : > { %v657_v7 = vadd.f32 %v648_v2, %v555_v6  ;;  %v558_v17 = vadd.f32 %v554_v3, %v439_v63 }
 0x305   : > { %v654_v4 = vpop.xlane.xlu1 %653  ;;  %v650_v5 = vpop.xlane.xlu0 %649 }
 0x306   : > { %v659_v13 = vadd.f32 %v654_v4, %v557_v10  ;;  %v658_v14 = vadd.f32 %v650_v5, %v556_v11 }
 0x309   : > { %v750_v8 = vpop.xlane.xlu1 %749  ;;  %v656_v9 = vpop.xlane.xlu0 %655 }
 0x30a   : > { %v759_v12 = vadd.f32 %v750_v8, %v657_v7  ;;  %v660_v20 = vadd.f32 %v656_v9, %v558_v17 }
 0x30d   : > { %v756_v15 = vpop.xlane.xlu1 %755  ;;  %v752_v16 = vpop.xlane.xlu0 %751 }
 0x30e   : > { %v761_v18 = vadd.f32 %v756_v15, %v659_v13  ;;  %v760_v19 = vadd.f32 %v752_v16, %v658_v14  ;;  %766 = sbr.rel (%p1080_p11) target bundleno = 790 (0x316), region = 32 }
 0x311   : > { %v758_v21 = vpop.xlane.xlu0 %757 }
 0x312   : > { %v762_v22 = vadd.f32 %v758_v21, %v660_v20 }
 0x313   : > { %vm767_vm2 = vcmask 7168   ;;  %v1329_v23 = vmov 0.0  }
 0x314   : > { %768 = vst.msk [vmem:[#allocation2] sm:$0xff] %vm767_vm2, %v1329_v23  ;;  %769 = vst.msk [vmem:[#allocation2 + $0x8] sm:$0xff] %vm767_vm2, %v1329_v23 }
 0x315   : > { %770 = vst.msk [vmem:[#allocation3] sm:$0xff] %vm767_vm2, %v1329_v23  ;;  %771 = vst.msk [vmem:[#allocation3 + $0x8] sm:$0xff] %vm767_vm2, %v1329_v23 }
 0x316 PF: > { %vm776_vm3 = vcmask 7168   ;;  %p1081_p12 = scmp.ne.s32.totalorder %s1300_s14, 1 }
 0x317   : > { %s1330_s12 = smov (!%p1081_p12), 1  }
 0x31b   : > { %v772_v24 = vld [vmem:[#allocation2] sm:$0xff]  ;;  %v773_v25 = vld [vmem:[#allocation2 + $0x8] sm:$0xff]  ;;  %788 = sbr.rel (%p1081_p12) target bundleno = 927 (0x39f), region = 36 }
 0x31c   : > { %v779_v26 = vld [vmem:[#allocation3] sm:$0xff]  ;;  %v774_v27 = vadd.f32 %v772_v24, %v759_v12  ;;  %v775_v28 = vadd.f32 %v773_v25, %v760_v19  ;;  %v780_v30 = vld [vmem:[#allocation3 + $0x8] sm:$0xff] }
 0x31d   : > { %v781_v29 = vadd.f32 %v779_v26, %v761_v18  ;;  %v782_v31 = vadd.f32 %v780_v30, %v762_v22 }
 0x31e   : > { %777 = vst.msk [vmem:[#allocation2] sm:$0xff] %vm776_vm3, %v774_v27  ;;  %778 = vst.msk [vmem:[#allocation2 + $0x8] sm:$0xff] %vm776_vm3, %v775_v28 }
 0x31f   : > { %783 = vst.msk [vmem:[#allocation3] sm:$0xff] %vm776_vm3, %v781_v29  ;;  %784 = vst.msk [vmem:[#allocation3 + $0x8] sm:$0xff] %vm776_vm3, %v782_v31 }
 0x320   : > { %vm803_vm4 = vcmask 15368  }
 0x325   : > { %v789_v34 = vld [vmem:[#allocation2] sm:$0xff]  ;;  %v790_v35 = vld [vmem:[#allocation2 + $0x8] sm:$0xff] }
 0x326   : > { %v793_v32 = vld [vmem:[#allocation3] sm:$0xff]  ;;  %791 = vst.msk [vmem:[%s1417_s8] sm:$0xff] %vm776_vm3, %v789_v34  ;;  %v794_v33 = vld [vmem:[#allocation3 + $0x8] sm:$0xff]  ;;  %792 = vst.msk [vmem:[%s1417_s8 + $0x8] sm:$0xff] %vm776_vm3, %v790_v35 }
 0x327   : > { %797 = vrot.lane.b32.xlu0 %v793_v32, %s1330_s12 }
 0x32b   : > { %799 = vrot.lane.b32.xlu0 %v794_v33, %s1330_s12 }
 0x399   : > { %v798_v36 = vpop.permute.xlu0 %797 }
 0x39a   : > { %804 = vst.msk [vmem:[%s1417_s8] sm:$0xff] %vm803_vm4, %v798_v36 }
 0x39d   : > { %v800_v37 = vpop.permute.xlu0 %799 }
 0x39e   : > { %805 = vst.msk [vmem:[%s1417_s8 + $0x8] sm:$0xff] %vm803_vm4, %v800_v37 }
 0x39f PF: > { %821 = sbr.rel (!%p1397_p5) target bundleno = 935 (0x3a7), region = 40  ;;  %s1083_s29 = sshll.u32 (%p1397_p5), %s1304_s15, 4  ;;  %v844_v38 = vld [vmem:[%s1551_s28] sm:$0xf] (%p1397_p5)  ;;  %v846_v39 = vld [vmem:[%s1551_s28 + $0x4] sm:$0xf] (%p1397_p5) }
 0x3a0   : > { %s825_s30 = sadd.s32 (%p1397_p5), %s1300_s14, %s1083_s29  ;;  %v848_v40 = vld [vmem:[%s1551_s28 + $0x8] sm:$0xf] (%p1397_p5)  ;;  %v850_v41 = vld [vmem:[%s1551_s28 + $0xc] sm:$0xf] (%p1397_p5)  ;;  %v852_v42 = vld [vmem:[%s1551_s28 + $0x10] sm:$0xf] (%p1397_p5) }
 0x3a1   : > { %s1084_s8 = sshll.u32 (%p1397_p5), %s825_s30, 2  ;;  %v854_v43 = vld [vmem:[%s1551_s28 + $0x14] sm:$0xf] (%p1397_p5)  ;;  %v856_v44 = vld [vmem:[%s1551_s28 + $0x18] sm:$0xf] (%p1397_p5) }
 0x3a2   : > { %s827_s5 = scalar_lea.vmem (%p1397_p5), %s1607_s2, %s1084_s8  ;;  %v858_v45 = vld [vmem:[%s1551_s28 + $0x1c] sm:$0xf] (%p1397_p5) }
 0x3a3   : > { %845 = vst [vmem:[%s827_s5] sm:$0xf] (%p1397_p5), %v844_v38  ;;  %847 = vst [vmem:[%s827_s5 + $0x8] sm:$0xf] (%p1397_p5), %v846_v39 }
 0x3a4   : > { %849 = vst [vmem:[%s827_s5 + $0x10] sm:$0xf] %v848_v40  ;;  %851 = vst [vmem:[%s827_s5 + $0x18] sm:$0xf] %v850_v41 }
 0x3a5   : > { %853 = vst [vmem:[%s827_s5 + $0x20] sm:$0xf] %v852_v42  ;;  %855 = vst [vmem:[%s827_s5 + $0x28] sm:$0xf] %v854_v43 }
 0x3a6   : > { %857 = vst [vmem:[%s827_s5 + $0x30] sm:$0xf] %v856_v44  ;;  %859 = vst [vmem:[%s827_s5 + $0x38] sm:$0xf] %v858_v45 }
 0x3a7 PF: > { %s14_s18 = sadd.s32 1, %s1316_s18   ;;  %s1612_s12 = smov %s1296_s13 }
 0x3a8   : > { %p11_p13 = scmp.ge.s32.totalorder %s14_s18, 6   ;;  %s1613_s13 = smov %s1408_s27 }
 0x3a9   : > { %s1614_s14 = smov %s1308_s16  ;;  %s1615_s15 = smov %s1312_s17 }
 0x3aa   : > { %s1616_s16 = smov %s1619_s19  ;;  %s1617_s17 = smov %s1623_s20 }
 0x3ab   :  { %13 = sbr.rel (!%p11_p13) target bundleno = 4 (0x4), region = 128 }

</bundles_post_ra>
